<compile_context>
chip_gen: v5e
topology: v5e:2x2
jax: 0.10.0
libtpu: 0.0.40
codegen_flags: <defaults>
</compile_context>

<pallas_src>
import math

import numpy as np
import jax
import jax.numpy as jnp
from jax import lax
from jax.experimental import pallas as pl
from jax.experimental.pallas import tpu as pltpu


def _bilinear_matrix(n_in: int, n_out: int) -> np.ndarray:
    """1-D bilinear resize matrix, align_corners=True (PyTorch nn.Upsample)."""
    if n_out == 1:
        src = np.zeros((1,), np.float64)
    else:
        src = np.arange(n_out, dtype=np.float64) * (n_in - 1) / (n_out - 1)
    i0 = np.clip(np.floor(src).astype(np.int64), 0, n_in - 1)
    i1 = np.minimum(i0 + 1, n_in - 1)
    frac = src - i0
    m = np.zeros((n_out, n_in), np.float64)
    m[np.arange(n_out), i0] += 1.0 - frac
    m[np.arange(n_out), i1] += frac
    return m.astype(np.float32)


def _shift_rows(mat: np.ndarray, delta: int) -> np.ndarray:
    """out[r] = mat[r + delta], zero rows where r + delta is out of range."""
    out = np.zeros_like(mat)
    n_r = mat.shape[0]
    if delta >= 0:
        out[:n_r - delta] = mat[delta:]
    else:
        out[-delta:] = mat[:n_r + delta]
    return out


def _pick_batch_block(batch: int, rows_per_item: int, max_rows: int = 512) -> int:
    """Batch elements stacked on the sublane (row) axis per grid step.

    Prefer >= 2 grid steps whenever batch >= 2 (keeps both v7x TensorCores busy
    and lets the x/out DMAs pipeline) while bounding the per-step sublane extent
    so the x / out VMEM buffers stay small.  M stays compact, so b_blk no longer
    multiplies the dominant pass-2 cost.
    """
    divisors = [d for d in range(1, batch + 1) if batch % d == 0]
    for n_steps in divisors:                       # ascending: fewest steps first
        if batch >= 2 and n_steps < 2:
            continue                               # insist on >= 2 parallel steps
        if (batch // n_steps) * rows_per_item <= max_rows:
            return batch // n_steps
    return 1


def _upsample_conv_kernel(x_ref, wh_ref, m_ref, out_ref):
    # x_ref   : (1, Bblk*H, Cin*W)        bf16  batch block stacked on sublanes
    # wh_ref  : (3*Bblk*H_up, Bblk*H)     bf16  fused + shifted + block-diag row pass
    # m_ref   : (3, Cin*W, Cout*W_up)     bf16  compact col-interp + pad + conv w
    # out_ref : (1, Bblk*H_up, Cout*W_up) f32
    rows = out_ref.shape[1]                                    # Bblk * H_up
    # Pass 1: ONE fused MXU matmul covering all three vertical taps.
    t = jnp.dot(wh_ref[...], x_ref[0],
                preferred_element_type=jnp.float32)            # (3*rows, Cin*W)
    t = t.astype(m_ref.dtype)                                  # bf16 operands for pass 2
    # Pass 2: three accumulating matmuls against the COMPACT M (no structural
    # zeros); the per-tap operands are free static sublane slices of t.
    acc = jnp.dot(t[0:rows], m_ref[0], preferred_element_type=jnp.float32)
    for ky in range(1, 3):
        acc = acc + jnp.dot(t[ky * rows:(ky + 1) * rows], m_ref[ky],
                            preferred_element_type=jnp.float32)
    out_ref[0] = acc.astype(out_ref.dtype)


def upsample_maxpool(x, conv_w, scale_factor):
    """Pallas implementation of UpsampleMaxPool.forward.
    x: (N, Cin, H, W) f32, conv_w: (Cout, Cin, 3, 3) f32."""
    n, cin, h, w = x.shape
    cout = conv_w.shape[0]
    h_up, w_up = int(h * scale_factor), int(w * scale_factor)

    # ---- static (shape-only) interpolation / shift matrices (numpy) ------------
    wh = _bilinear_matrix(h, h_up)                                   # (H_up, H)
    ww = _bilinear_matrix(w, w_up)                                   # (W_up, W)
    wh_stack = np.stack([_shift_rows(wh, k - 1) for k in range(3)])  # (3, H_up, H)
    wwt_stack = np.stack([_shift_rows(ww, k - 1).T for k in range(3)])  # (3, W, W_up)

    # ---- batch block: rows (sublanes) carry the batch, lanes stay compact -------
    b_blk = _pick_batch_block(n, h_up)
    n_steps = n // b_blk
    rows_in, rows_out = b_blk * h, b_blk * h_up
    lanes_in, lanes_out = cin * w, cout * w_up

    # ---- fused row-pass matrix: block-diagonal over the (tiny) batch block ------
    eye_b = np.eye(b_blk, dtype=np.float32)
    wh2d = np.concatenate([np.kron(eye_b, wh_stack[k]) for k in range(3)],
                          axis=0)                          # (3*Bblk*H_up, Bblk*H)
    wh2d = jnp.asarray(wh2d, jnp.bfloat16)

    # ---- fold col-interp + horizontal shift/pad + conv weights into compact M ---
    # tiny weight preprocessing, independent of batch/H: O(9*Cin*Cout*W*W_up)
    m = jnp.einsum('ocyk,kqx->ycqox', conv_w.astype(jnp.float32),
                   jnp.asarray(wwt_stack, jnp.float32),
                   precision=lax.Precision.HIGHEST)        # (3, Cin, W, Cout, W_up)
    m = m.reshape(3, lanes_in, lanes_out).astype(jnp.bfloat16)

    # ---- pack input as (n_steps, Bblk*H, Cin*W); rows = (b, h), lanes = (c, w) --
    # (layout plumbing only; in a larger net keep activations in this layout)
    x_p = x.reshape(n_steps, b_blk, cin, h, w)
    x_p = jnp.transpose(x_p, (0, 1, 3, 2, 4)).reshape(n_steps, rows_in, lanes_in)
    x_p = x_p.astype(jnp.bfloat16)

    grid_spec = pltpu.PrefetchScalarGridSpec(
        num_scalar_prefetch=0,
        grid=(n_steps,),
        in_specs=[
            pl.BlockSpec((1, rows_in, lanes_in), lambda i: (i, 0, 0)),
            pl.BlockSpec((3 * rows_out, rows_in), lambda i: (0, 0)),       # grid-invariant
            pl.BlockSpec((3, lanes_in, lanes_out), lambda i: (0, 0, 0)),   # grid-invariant
        ],
        out_specs=pl.BlockSpec((1, rows_out, lanes_out), lambda i: (i, 0, 0)),
    )

    # explicit VMEM budget: double buffers of x/out + WH/M copies, with headroom
    resident = 2 * (rows_in * lanes_in * 2 + rows_out * lanes_out * 4
                    + 3 * rows_out * rows_in * 2 + 3 * lanes_in * lanes_out * 2)
    vmem_limit = int(min(96 * 2**20, max(8 * 2**20, 4 * resident)))

    out_packed = pl.pallas_call(
        _upsample_conv_kernel,
        out_shape=jax.ShapeDtypeStruct((n_steps, rows_out, lanes_out), jnp.float32),
        grid_spec=grid_spec,
        compiler_params=pltpu.CompilerParams(
            dimension_semantics=("parallel",),   # v7x: both TCs when n_steps >= 2
            vmem_limit_bytes=vmem_limit),
    )(x_p, wh2d, m)

    # ---- unpack rows (b, y') / lanes (o, x') back to NCHW (layout plumbing) -----
    out = out_packed.reshape(n_steps, b_blk, h_up, cout, w_up)
    out = jnp.transpose(out, (0, 1, 3, 2, 4)).reshape(n, cout, h_up, w_up)
    return out


def _reference(x, conv_w, scale_factor):
    """Plain-JAX golden reference: bilinear upsample (align_corners=True) + 3x3 conv."""
    n, cin, h, w = x.shape
    h_up, w_up = int(h * scale_factor), int(w * scale_factor)
    wh = jnp.asarray(_bilinear_matrix(h, h_up))
    ww = jnp.asarray(_bilinear_matrix(w, w_up))
    up = jnp.einsum('Hh,nchw->ncHw', wh, x, precision=lax.Precision.HIGHEST)
    up = jnp.einsum('Ww,ncHw->ncHW', ww, up, precision=lax.Precision.HIGHEST)
    return lax.conv_general_dilated(
        up, conv_w, window_strides=(1, 1), padding=((1, 1), (1, 1)),
        dimension_numbers=('NCHW', 'OIHW', 'NCHW'),
        precision=lax.Precision.HIGHEST)


if __name__ == "__main__":
    key = jax.random.PRNGKey(0)
    kx, kw = jax.random.split(key)

    n_feat, kernel_size = 4, 2       # module args: UpsampleMaxPool(n_feat=4, kernel_size=2)
    batch, h, w = 2, 16, 16
    x = jax.random.normal(kx, (batch, n_feat, h, w), jnp.float32)
    conv_w = jax.random.normal(kw, (n_feat // 2, n_feat, 3, 3), jnp.float32)
    conv_w = conv_w * (1.0 / math.sqrt(n_feat * 9))   # deterministic Kaiming-like scale

    fwd = jax.jit(lambda xx, ww: upsample_maxpool(xx, ww, kernel_size))
    out = jax.block_until_ready(fwd(x, conv_w))

    ref = _reference(x, conv_w, kernel_size)
    assert out.shape == ref.shape == (batch, n_feat // 2, h * kernel_size, w * kernel_size)
    # Tolerance documents bf16-operand MXU arithmetic (default matmul precision,
    # bf16-stored inputs/weights) vs a Precision.HIGHEST f32 reference.
    np.testing.assert_allclose(np.asarray(out), np.asarray(ref), rtol=2e-2, atol=2e-2)

    print("KERNEL_OK")
</pallas_src>

<mosaic_0001>
module attributes {stable_mosaic.version = 11 : i64} {
  func.func @_upsample_conv_kernel(%arg0: i32, %arg1: memref<1x16x64xbf16, #tpu.memory_space<vmem>>, %arg2: memref<96x16xbf16, #tpu.memory_space<vmem>>, %arg3: memref<3x64x64xbf16, #tpu.memory_space<vmem>>, %arg4: memref<1x32x64xf32, #tpu.memory_space<vmem>>) attributes {dimension_semantics = [#tpu.dimension_semantics<parallel>], iteration_bounds = array<i64: 2>, scalar_prefetch = 0 : i64, scratch_operands = 0 : i64, tpu.core_type = #tpu.core_type<tc>, window_params = [{transform_indices = @transform_0, window_bounds = array<i64: 1, 16, 64>}, {pipeline_mode = #tpu.pipeline_mode<synchronous>, transform_indices = @transform_1, window_bounds = array<i64: 96, 16>}, {pipeline_mode = #tpu.pipeline_mode<synchronous>, transform_indices = @transform_2, window_bounds = array<i64: 3, 64, 64>}, {transform_indices = @transform_3, window_bounds = array<i64: 1, 32, 64>}]} {
    %c0 = arith.constant 0 : index
    %c0_0 = arith.constant 0 : index
    %0 = vector.load %arg2[%c0, %c0_0] : memref<96x16xbf16, #tpu.memory_space<vmem>>, vector<96x16xbf16>
    %c0_1 = arith.constant 0 : index
    %c0_2 = arith.constant 0 : index
    %c0_3 = arith.constant 0 : index
    %1 = vector.load %arg1[%c0_1, %c0_2, %c0_3] : memref<1x16x64xbf16, #tpu.memory_space<vmem>>, vector<1x16x64xbf16>
    %2 = vector.shape_cast %1 : vector<1x16x64xbf16> to vector<16x64xbf16>
    %cst = arith.constant dense<0.000000e+00> : vector<96x64xf32>
    %3 = tpu.matmul %0, %2, %cst {dimension_numbers = #tpu.dot_dimension_numbers<[1], [0], [0], [1], [0, 0, 1, 1], [], []>} : vector<96x16xbf16>, vector<16x64xbf16>, vector<96x64xf32> -> vector<96x64xf32>
    %4 = arith.truncf %3 : vector<96x64xf32> to vector<96x64xbf16>
    %5 = vector.extract_strided_slice %4 {offsets = [0, 0], sizes = [32, 64], strides = [1, 1]} : vector<96x64xbf16> to vector<32x64xbf16>
    %c0_4 = arith.constant 0 : index
    %c0_5 = arith.constant 0 : index
    %c0_6 = arith.constant 0 : index
    %6 = vector.load %arg3[%c0_4, %c0_5, %c0_6] : memref<3x64x64xbf16, #tpu.memory_space<vmem>>, vector<1x64x64xbf16>
    %7 = vector.shape_cast %6 : vector<1x64x64xbf16> to vector<64x64xbf16>
    %cst_7 = arith.constant dense<0.000000e+00> : vector<32x64xf32>
    %8 = tpu.matmul %5, %7, %cst_7 {dimension_numbers = #tpu.dot_dimension_numbers<[1], [0], [0], [1], [0, 0, 1, 1], [], []>} : vector<32x64xbf16>, vector<64x64xbf16>, vector<32x64xf32> -> vector<32x64xf32>
    %9 = vector.extract_strided_slice %4 {offsets = [32, 0], sizes = [32, 64], strides = [1, 1]} : vector<96x64xbf16> to vector<32x64xbf16>
    %c1 = arith.constant 1 : index
    %c0_8 = arith.constant 0 : index
    %c0_9 = arith.constant 0 : index
    %10 = vector.load %arg3[%c1, %c0_8, %c0_9] : memref<3x64x64xbf16, #tpu.memory_space<vmem>>, vector<1x64x64xbf16>
    %11 = vector.shape_cast %10 : vector<1x64x64xbf16> to vector<64x64xbf16>
    %cst_10 = arith.constant dense<0.000000e+00> : vector<32x64xf32>
    %12 = tpu.matmul %9, %11, %cst_10 {dimension_numbers = #tpu.dot_dimension_numbers<[1], [0], [0], [1], [0, 0, 1, 1], [], []>} : vector<32x64xbf16>, vector<64x64xbf16>, vector<32x64xf32> -> vector<32x64xf32>
    %13 = arith.addf %8, %12 : vector<32x64xf32>
    %14 = vector.extract_strided_slice %4 {offsets = [64, 0], sizes = [32, 64], strides = [1, 1]} : vector<96x64xbf16> to vector<32x64xbf16>
    %c2 = arith.constant 2 : index
    %c0_11 = arith.constant 0 : index
    %c0_12 = arith.constant 0 : index
    %15 = vector.load %arg3[%c2, %c0_11, %c0_12] : memref<3x64x64xbf16, #tpu.memory_space<vmem>>, vector<1x64x64xbf16>
    %16 = vector.shape_cast %15 : vector<1x64x64xbf16> to vector<64x64xbf16>
    %cst_13 = arith.constant dense<0.000000e+00> : vector<32x64xf32>
    %17 = tpu.matmul %14, %16, %cst_13 {dimension_numbers = #tpu.dot_dimension_numbers<[1], [0], [0], [1], [0, 0, 1, 1], [], []>} : vector<32x64xbf16>, vector<64x64xbf16>, vector<32x64xf32> -> vector<32x64xf32>
    %18 = arith.addf %13, %17 : vector<32x64xf32>
    %c0_14 = arith.constant 0 : index
    %c0_15 = arith.constant 0 : index
    %c0_16 = arith.constant 0 : index
    %19 = vector.load %arg4[%c0_14, %c0_15, %c0_16] : memref<1x32x64xf32, #tpu.memory_space<vmem>>, vector<1x32x64xf32>
    %20 = vector.shape_cast %19 : vector<1x32x64xf32> to vector<32x64xf32>
    %21 = vector.shape_cast %18 : vector<32x64xf32> to vector<1x32x64xf32>
    tpu.vector_store %arg4[%c0_14, %c0_15, %c0_16], %21 {strides = array<i32>} : memref<1x32x64xf32, #tpu.memory_space<vmem>>, vector<1x32x64xf32>,
    return
  }
  func.func @transform_0(%arg0: i32) -> (i32, i32, i32) {
    %c0_i32 = arith.constant 0 : i32
    %c0_i32_0 = arith.constant 0 : i32
    %c0_i32_1 = arith.constant 0 : i32
    return %arg0, %c0_i32, %c0_i32_0 : i32, i32, i32
  }
  func.func @transform_1(%arg0: i32) -> (i32, i32) {
    %c0_i32 = arith.constant 0 : i32
    %c0_i32_0 = arith.constant 0 : i32
    %c0_i32_1 = arith.constant 0 : i32
    return %c0_i32, %c0_i32_0 : i32, i32
  }
  func.func @transform_2(%arg0: i32) -> (i32, i32, i32) {
    %c0_i32 = arith.constant 0 : i32
    %c0_i32_0 = arith.constant 0 : i32
    %c0_i32_1 = arith.constant 0 : i32
    %c0_i32_2 = arith.constant 0 : i32
    return %c0_i32, %c0_i32_0, %c0_i32_1 : i32, i32, i32
  }
  func.func @transform_3(%arg0: i32) -> (i32, i32, i32) {
    %c0_i32 = arith.constant 0 : i32
    %c0_i32_0 = arith.constant 0 : i32
    %c0_i32_1 = arith.constant 0 : i32
    return %arg0, %c0_i32, %c0_i32_0 : i32, i32, i32
  }
}

</mosaic_0001>

<bundles_post_ra>
// kernel: _lambda_.1
= control target key start
LH: loop header
LB: loop body
LE: loop exit
PB: predicated region body
PF: predicated region fallthrough
CT: control target
= control target key end

     0   :  { %s732_s12 = smov 0   ;;  %s817_s0 = inlined_call_operand.vmem [shape: bf16[2,16,64], index: 0, kind: input, shape index: {}]   ;;  %s818_s1 = inlined_call_operand.vmem [shape: bf16[96,16], index: 1, kind: input, shape index: {}]   ;;  %s819_s2 = inlined_call_operand.vmem [shape: bf16[3,64,64], index: 2, kind: input, shape index: {}]   ;;  %s820_s3 = inlined_call_operand.vmem [shape: f32[2,32,64], index: 3, kind: output, shape index: {}]  }
   0x1 LB: > { %s559_s13 = sadd.s32 4294967295, %s710_s12   ;;  %p563_p0 = scmp.ge.s32.totalorder %s710_s12, 1  ;;  %s710_s12 = sphi %s732_s12, %s13_s12  }
   0x2   : > { %p137_p1 = scmp.lt.s32.totalorder %s710_s12, 3 }
   0x4   : > { %p138_p2 = pnand %p563_p0, %p137_p1 }
   0x5   : > { %p161_p3 = scmp.lt.s32.totalorder (!%p138_p2), %s559_s13, 1 }
   0x6   : > { %141 = sbr.rel (%p138_p2) target bundleno = 345 (0x159), region = 32 }
   0xb   : > { %s822_s13 = smov (!%p161_p3, %s559_s13), 1  ;;  %v676_v1 = vld [vmem:[%s818_s1] sm:$0xff]  ;;  %vm222_vm0 = vcmask 130048   ;;  %v677_v3 = vld [vmem:[%s818_s1 + $0x8] sm:$0xff]  ;;  %v678_v5 = vld [vmem:[%s818_s1 + $0x10] sm:$0xff]  ;;  %vm343_vm1 = vcmask 523264  }
   0xc   : > { %s674_s14 = sshll.u32 %s822_s13, 3  ;;  %v680_v2 = vld [vmem:[%s818_s1 + $0x20] sm:$0xff]  ;;  %v681_v4 = vld [vmem:[%s818_s1 + $0x28] sm:$0xff]  ;;  %v679_v6 = vld [vmem:[%s818_s1 + $0x18] sm:$0xff]  ;;  %s675_s29 = sshll.u32 %s822_s13, 5 }
   0xd   : > { %s165_s17 = scalar_lea.vmem %s817_s0, %s674_s14  ;;  %v686_v7 = vld [vmem:[%s819_s2 + $0x18] sm:$0xff]  ;;  %v685_v8 = vld [vmem:[%s819_s2 + $0x10] sm:$0xff]  ;;  %v684_v9 = vld [vmem:[%s819_s2 + $0x8] sm:$0xff]  ;;  %s170_s5 = scalar_lea.vmem %s820_s3, %s675_s29 }
   0xe   : > { %v682_v0 = vld [vmem:[%s165_s17] sm:$0xff]  ;;  %413 = vmatpush.bf16.msra.mxu2 %v686_v7  ;;  %v694_v11 = vld [vmem:[%s819_s2 + $0x58] sm:$0xff]  ;;  %v693_v13 = vld [vmem:[%s819_s2 + $0x50] sm:$0xff] }
   0xf   : > { %248 = vmatpush.bf16.msra.mxu0 %v682_v0  ;;  %695 = vmatpush.bf16.msra.mxu1 %v682_v0  ;;  %v683_v10 = vld [vmem:[%s819_s2] sm:$0xff]  ;;  %v690_v12 = vld [vmem:[%s819_s2 + $0x38] sm:$0xff]  ;;  %v692_v14 = vld [vmem:[%s819_s2 + $0x48] sm:$0xff] }
  0x10   : > { %481 = vmatpush.bf16.msra.mxu3 %v694_v11  ;;  %v689_v15 = vld [vmem:[%s819_s2 + $0x30] sm:$0xff]  ;;  %v691_v16 = vld [vmem:[%s819_s2 + $0x40] sm:$0xff]  ;;  %v688_v17 = vld [vmem:[%s819_s2 + $0x28] sm:$0xff] }
  0x11   : > { %v687_v20 = vld [vmem:[%s819_s2 + $0x20] sm:$0xff] }
  0x12   : > { %596 = vmatmul.msk.bf16.vlgmr.msra.gmra.mxu0 %vm222_vm0, %v676_v1  ;;  %600 = vmatmul.msk.bf16.vlgmr.msra.gmra.mxu1 %vm222_vm0, %v680_v2 }
  0x13   : > { %414 = vmatpush.bf16.msra.mxu2 %v685_v8  ;;  %354 = vmatpush.bf16.msrb.mxu1 %v690_v12 }
  0x14   : > { %482 = vmatpush.bf16.msra.mxu3 %v693_v13 }
  0x17   : > { %415 = vmatpush.bf16.msra.mxu2 %v684_v9  ;;  %355 = vmatpush.bf16.msrb.mxu1 %v689_v15 }
  0x18   : > { %483 = vmatpush.bf16.msra.mxu3 %v692_v14 }
  0x1b   : > { %416 = vmatpush.bf16.msra.mxu2 %v683_v10  ;;  %356 = vmatpush.bf16.msrb.mxu1 %v688_v17 }
  0x1c   : > { %484 = vmatpush.bf16.msra.mxu3 %v691_v16 }
  0x1f   : > { %357 = vmatpush.bf16.msrb.mxu1 %v687_v20 }
  0x22   : > { %597 = vmatmul.msk.bf16.gmra.mxu0 %vm222_vm0, %v677_v3  ;;  %601 = vmatmul.msk.bf16.gmra.mxu1 %vm222_vm0, %v681_v4 }
  0x32   : > { %598 = vmatmul.msk.bf16.gmra.mxu0 %vm222_vm0, %v678_v5 }
  0x42   : > { %599 = vmatmul.msk.bf16.gmra.mxu0 %vm222_vm0, %v679_v6 }
  0x8f   : > { %v250_v18 = vpop.f32.mrf.mxu0  ;;  %v270_v19 = vpop.f32.mrf.mxu1 }
  0x90   : > { %v288_v21 = vpack.c.bf16 %v270_v19, %v270_v19  ;;  %v280_v22 = vpack.c.bf16 %v250_v18, %v250_v18 }
  0x92   : > { %v441_v26 = vunpack.c.l.b16 %v288_v21  ;;  %v373_v28 = vunpack.c.l.b16 %v280_v22 }
  0x97   : > { %v252_v23 = vpop.f32.mrf.mxu0  ;;  %v272_v24 = vpop.f32.mrf.mxu1 }
  0x98   : > { %v281_v25 = vpack.c.bf16 %v252_v23, %v252_v23  ;;  %v289_v27 = vpack.c.bf16 %v272_v24, %v272_v24 }
  0x9a   : > { %v374_v29 = vunpack.c.l.b16 %v281_v25  ;;  %v442_v30 = vunpack.c.l.b16 %v289_v27 }
  0x9c   : > { %v377_v31 = vpack.c.b16 %v374_v29, %v373_v28  ;;  %v445_v32 = vpack.c.b16 %v442_v30, %v441_v26 }
  0x9e   : > { %644 = vmatmul.msk.bf16.vlgmr.msra.gmra.mxu2 %vm343_vm1, %v377_v31  ;;  %670 = vmatmul.msk.bf16.vlgmr.msra.gmra.mxu3 %vm343_vm1, %v445_v32 }
  0x9f   : > { %v255_v33 = vpop.f32.mrf.mxu0  ;;  %v275_v34 = vpop.f32.mrf.mxu1 }
  0xa0   : > { %v290_v35 = vpack.c.bf16 %v275_v34, %v275_v34  ;;  %v282_v36 = vpack.c.bf16 %v255_v33, %v255_v33 }
  0xa2   : > { %v443_v40 = vunpack.c.l.b16 %v290_v35  ;;  %v375_v42 = vunpack.c.l.b16 %v282_v36 }
  0xa7   : > { %v257_v37 = vpop.f32.mrf.mxu0  ;;  %v277_v38 = vpop.f32.mrf.mxu1 }
  0xa8   : > { %v283_v39 = vpack.c.bf16 %v257_v37, %v257_v37  ;;  %v291_v41 = vpack.c.bf16 %v277_v38, %v277_v38 }
  0xaa   : > { %v376_v43 = vunpack.c.l.b16 %v283_v39  ;;  %v444_v44 = vunpack.c.l.b16 %v291_v41 }
  0xac   : > { %v378_v45 = vpack.c.b16 %v376_v43, %v375_v42  ;;  %v446_v46 = vpack.c.b16 %v444_v44, %v443_v40 }
  0xae   : > { %645 = vmatmul.msk.bf16.gmra.mxu2 %vm343_vm1, %v378_v45  ;;  %671 = vmatmul.msk.bf16.gmra.mxu3 %vm343_vm1, %v446_v46 }
  0xaf   : > { %v260_v47 = vpop.f32.mrf.mxu0 }
  0xb0   : > { %v284_v48 = vpack.c.bf16 %v260_v47, %v260_v47 }
  0xb2   : > { %v313_v51 = vunpack.c.l.b16 %v284_v48 }
  0xb7   : > { %v262_v49 = vpop.f32.mrf.mxu0 }
  0xb8   : > { %v285_v50 = vpack.c.bf16 %v262_v49, %v262_v49 }
  0xba   : > { %v314_v52 = vunpack.c.l.b16 %v285_v50 }
  0xbc   : > { %v317_v53 = vpack.c.b16 %v314_v52, %v313_v51 }
  0xbe   : > { %626 = vmatmul.msk.bf16.vlgmr.msrb.gmra.mxu1 %vm343_vm1, %v317_v53 }
  0xbf   : > { %v265_v54 = vpop.f32.mrf.mxu0 }
  0xc0   : > { %v286_v55 = vpack.c.bf16 %v265_v54, %v265_v54 }
  0xc2   : > { %v315_v58 = vunpack.c.l.b16 %v286_v55 }
  0xc7   : > { %v267_v56 = vpop.f32.mrf.mxu0 }
  0xc8   : > { %v287_v57 = vpack.c.bf16 %v267_v56, %v267_v56 }
  0xca   : > { %v316_v59 = vunpack.c.l.b16 %v287_v57 }
  0xcc   : > { %v318_v60 = vpack.c.b16 %v316_v59, %v315_v58 }
  0xce   : > { %627 = vmatmul.msk.bf16.gmra.mxu1 %vm343_vm1, %v318_v60 }
 0x121   : > { %v418_v61 = vpop.f32.mrf.mxu2  ;;  %v486_v62 = vpop.f32.mrf.mxu3 }
 0x129   : > { %v420_v2 = vpop.f32.mrf.mxu2  ;;  %v488_v3 = vpop.f32.mrf.mxu3 }
 0x131   : > { %v423_v7 = vpop.f32.mrf.mxu2  ;;  %v491_v8 = vpop.f32.mrf.mxu3 }
 0x139   : > { %v425_v12 = vpop.f32.mrf.mxu2  ;;  %v493_v15 = vpop.f32.mrf.mxu3 }
 0x13b   : > { %v359_v63 = vpop.f32.mrf.mxu1 }
 0x13c   : > { %v419_v0 = vadd.f32 %v418_v61, %v359_v63 }
 0x13e   : > { %v496_v1 = vadd.f32 %v486_v62, %v419_v0 }
 0x140   : > { %500 = vst.msk [vmem:[%s170_s5] sm:$0xff] %vm343_vm1, %v496_v1 }
 0x143   : > { %v361_v4 = vpop.f32.mrf.mxu1 }
 0x144   : > { %v421_v5 = vadd.f32 %v420_v2, %v361_v4 }
 0x146   : > { %v497_v6 = vadd.f32 %v488_v3, %v421_v5 }
 0x148   : > { %501 = vst.msk [vmem:[%s170_s5 + $0x8] sm:$0xff] %vm343_vm1, %v497_v6 }
 0x14b   : > { %v364_v9 = vpop.f32.mrf.mxu1 }
 0x14c   : > { %v424_v10 = vadd.f32 %v423_v7, %v364_v9 }
 0x14e   : > { %v498_v11 = vadd.f32 %v491_v8, %v424_v10 }
 0x150   : > { %502 = vst.msk [vmem:[%s170_s5 + $0x10] sm:$0xff] %vm343_vm1, %v498_v11 }
 0x153   : > { %v366_v13 = vpop.f32.mrf.mxu1 }
 0x154   : > { %v426_v14 = vadd.f32 %v425_v12, %v366_v13 }
 0x156   : > { %v499_v16 = vadd.f32 %v493_v15, %v426_v14 }
 0x158   : > { %503 = vst.msk [vmem:[%s170_s5 + $0x18] sm:$0xff] %vm343_vm1, %v499_v16 }
 0x159 PF: > { %s13_s12 = sadd.s32 1, %s710_s12  }
 0x15a   : > { %p10_p4 = scmp.ge.s32.totalorder %s13_s12, 4  }
 0x15c   :  { %12 = sbr.rel (!%p10_p4) target bundleno = 1 (0x1), region = 64 }

</bundles_post_ra>
